<compile_context>
chip_gen: v7x
topology: tpu7x:2x2x1
jax: 0.10.0
libtpu: 0.0.40
codegen_flags: <defaults>
</compile_context>

<pallas_src>
import math
from functools import partial

import jax
import jax.numpy as jnp
from jax.experimental import pallas as pl
from jax.experimental.pallas import tpu as pltpu

INPUT_DIM = 184
HIDDEN_DIMS = [256, 128, 64]
HEAD_NAMES = [
    "premium_pair", "mid_pair", "small_pair", "suited_broadway",
    "offsuit_broadway", "suited_connector", "suited_ace",
    "bluff_candidate", "strong_draw", "weak_draw",
]
NUM_HEADS = len(HEAD_NAMES)

DEFAULT_TILE_B = 4096            # rows per grid step (sweepable; ~14 MB/tile working set)
_SMALL_BATCH_SINGLE_TILE = 256   # below this, a single full-array block is cheapest
_VMEM_LIMIT_BYTES = 48 * 1024 * 1024
_FLOPS_PER_ROW = 2 * (INPUT_DIM * 256 + 256 * 128 + 128 * 64 + 64 * NUM_HEADS)  # 177408


def _round_up(n, m):
    return ((n + m - 1) // m) * m


def _range_network_kernel(x_ref, w1_ref, b1_ref, w2_ref, b2_ref,
                          w3_ref, b3_ref, wh_ref, bh_ref, o_ref):
    # Cast x to bf16 here (VPU) — avoids a separate XLA cast pass over HBM.
    x = x_ref[...].astype(jnp.bfloat16)
    # Layer 1: Linear(184 -> 256) + ReLU   (dropout = identity in eval)
    h = jnp.dot(x, w1_ref[...], preferred_element_type=jnp.float32)
    h = jnp.maximum(h + b1_ref[...], 0.0)
    # Layer 2: Linear(256 -> 128) + ReLU
    h = jnp.dot(h.astype(jnp.bfloat16), w2_ref[...],
                preferred_element_type=jnp.float32)
    h = jnp.maximum(h + b2_ref[...], 0.0)
    # Layer 3: Linear(128 -> 64) + ReLU
    h = jnp.dot(h.astype(jnp.bfloat16), w3_ref[...],
                preferred_element_type=jnp.float32)
    h = jnp.maximum(h + b3_ref[...], 0.0)
    # 10 output heads Linear(64 -> 1) stacked as one (64, 10) matmul + sigmoid (f32 math).
    logits = jnp.dot(h.astype(jnp.bfloat16), wh_ref[...],
                     preferred_element_type=jnp.float32) + bh_ref[...]
    o_ref[...] = jax.nn.sigmoid(logits).astype(o_ref.dtype)


@partial(jax.jit, static_argnames=("tile_b",))
def range_network_probs(x, params, *, tile_b=DEFAULT_TILE_B):
    """Runs the MLP + heads, returning packed [B, 10] bf16 sigmoid probabilities."""
    B = x.shape[0]
    tile_b = max(8, _round_up(int(tile_b), 8))

    # Batch tiling:
    #   * tiny B: one full-array block (legal even when B % 8 != 0);
    #   * otherwise: >= 2 tiles (both v7x TCs get work), each at most tile_b rows,
    #     tile rows a multiple of 8 (sublane constraint); last partial tile is fine
    #     because the math is per-row and OOB rows are discarded on store.
    if B <= min(tile_b, _SMALL_BATCH_SINGLE_TILE):
        tb = B
    else:
        tb = min(tile_b, _round_up(-(-B // 2), 8))
    grid = (pl.cdiv(B, tb),)

    def resident(i):  # weights/biases: same block every step -> stay resident in VMEM
        return (0, 0)

    def full_spec(arr):
        return pl.BlockSpec(arr.shape, resident)

    in_specs = [
        pl.BlockSpec((tb, INPUT_DIM), lambda i: (i, 0)),
        full_spec(params["w1"]), full_spec(params["b1"]),
        full_spec(params["w2"]), full_spec(params["b2"]),
        full_spec(params["w3"]), full_spec(params["b3"]),
        full_spec(params["wh"]), full_spec(params["bh"]),
    ]
    out_spec = pl.BlockSpec((tb, NUM_HEADS), lambda i: (i, 0))

    param_bytes = sum(int(v.size) * v.dtype.itemsize for v in params.values())
    cost = pl.CostEstimate(
        flops=B * _FLOPS_PER_ROW,
        transcendentals=B * NUM_HEADS,  # sigmoid per head
        bytes_accessed=B * INPUT_DIM * x.dtype.itemsize + B * NUM_HEADS * 2 + param_bytes,
    )

    return pl.pallas_call(
        _range_network_kernel,
        out_shape=jax.ShapeDtypeStruct((B, NUM_HEADS), jnp.bfloat16),
        grid=grid,
        in_specs=in_specs,
        out_specs=out_spec,
        cost_estimate=cost,
        compiler_params=pltpu.CompilerParams(
            dimension_semantics=("parallel",),      # megacore sharding of batch tiles
            vmem_limit_bytes=_VMEM_LIMIT_BYTES,     # covers the 4096-row working set
        ),
    )(x,
      params["w1"], params["b1"],
      params["w2"], params["b2"],
      params["w3"], params["b3"],
      params["wh"], params["bh"])


def range_network_forward(x, params, *, tile_b=DEFAULT_TILE_B):
    """Full forward; returns dict head_name -> [B, 1] bf16 probabilities.

    The dict split is a set of cheap graph-side slices on the tiny [B, 10] tensor.
    """
    packed = range_network_probs(x, params, tile_b=tile_b)
    return {name: packed[:, i:i + 1] for i, name in enumerate(HEAD_NAMES)}


def _xavier_uniform(key, fan_in, fan_out):
    """Matches nn.init.xavier_uniform_ (gain=1): U(-a, a), a = sqrt(6/(fan_in+fan_out))."""
    bound = math.sqrt(6.0 / (fan_in + fan_out))
    # Stored as [fan_in, fan_out] so the kernel does x @ W directly.
    return jax.random.uniform(key, (fan_in, fan_out), jnp.float32,
                              minval=-bound, maxval=bound)


def init_params(key):
    keys = jax.random.split(key, 4 + NUM_HEADS)
    dims = [INPUT_DIM] + HIDDEN_DIMS
    params = {}
    for i in range(3):
        # Weights stored bf16 (MXU operands / halved HBM bytes); biases stay f32.
        params[f"w{i+1}"] = _xavier_uniform(keys[i], dims[i], dims[i + 1]).astype(jnp.bfloat16)
        params[f"b{i+1}"] = jnp.zeros((1, dims[i + 1]), jnp.float32)
    # Each head is Linear(64, 1) with its own xavier init; stack columns -> (64, 10).
    head_cols = [_xavier_uniform(keys[3 + i], HIDDEN_DIMS[-1], 1)
                 for i in range(NUM_HEADS)]
    params["wh"] = jnp.concatenate(head_cols, axis=1).astype(jnp.bfloat16)  # [64, 10]
    params["bh"] = jnp.zeros((1, NUM_HEADS), jnp.float32)                   # [1, 10]
    return params


def _reference_forward(x, params):
    """Plain-JAX reference matching the kernel math (bf16 operands, f32 accumulate)."""
    xb = x.astype(jnp.bfloat16)
    h = jnp.maximum(jnp.dot(xb, params["w1"], preferred_element_type=jnp.float32)
                    + params["b1"], 0.0)
    h = jnp.maximum(jnp.dot(h.astype(jnp.bfloat16), params["w2"],
                            preferred_element_type=jnp.float32) + params["b2"], 0.0)
    h = jnp.maximum(jnp.dot(h.astype(jnp.bfloat16), params["w3"],
                            preferred_element_type=jnp.float32) + params["b3"], 0.0)
    logits = jnp.dot(h.astype(jnp.bfloat16), params["wh"],
                     preferred_element_type=jnp.float32) + params["bh"]
    return jax.nn.sigmoid(logits)


if __name__ == "__main__":
    key = jax.random.PRNGKey(0)
    k_params, k_x, k_x2 = jax.random.split(key, 3)

    params = init_params(k_params)

    # Small-shape check (single grid step), f32 input cast inside the kernel.
    batch = 8
    x = jax.random.normal(k_x, (batch, INPUT_DIM), jnp.float32)
    outputs = range_network_forward(x, params)
    jax.block_until_ready(outputs)

    ref = _reference_forward(x, params)
    got = jnp.concatenate([outputs[name] for name in HEAD_NAMES], axis=1).astype(jnp.float32)
    assert got.shape == (batch, NUM_HEADS)
    assert jnp.allclose(got, ref, atol=1e-2, rtol=1e-2), "mismatch vs reference (B=8)"

    # Grid-exercise check: multiple tiles + partial last tile (B=20, tile_b=8 -> grid=(3,)).
    batch2 = 20
    x2 = jax.random.normal(k_x2, (batch2, INPUT_DIM), jnp.float32)
    got2 = range_network_probs(x2, params, tile_b=8)
    jax.block_until_ready(got2)
    ref2 = _reference_forward(x2, params)
    assert got2.shape == (batch2, NUM_HEADS)
    assert jnp.allclose(got2.astype(jnp.float32), ref2, atol=1e-2, rtol=1e-2), \
        "mismatch vs reference (B=20, tiled)"

    print("KERNEL_OK")
</pallas_src>

<mosaic_0001>
module attributes {stable_mosaic.version = 11 : i64} {
  func.func @_range_network_kernel(%arg0: i32, %arg1: memref<8x184xf32, #tpu.memory_space<vmem>>, %arg2: memref<184x256xbf16, #tpu.memory_space<vmem>>, %arg3: memref<1x256xf32, #tpu.memory_space<vmem>>, %arg4: memref<256x128xbf16, #tpu.memory_space<vmem>>, %arg5: memref<1x128xf32, #tpu.memory_space<vmem>>, %arg6: memref<128x64xbf16, #tpu.memory_space<vmem>>, %arg7: memref<1x64xf32, #tpu.memory_space<vmem>>, %arg8: memref<64x10xbf16, #tpu.memory_space<vmem>>, %arg9: memref<1x10xf32, #tpu.memory_space<vmem>>, %arg10: memref<8x10xbf16, #tpu.memory_space<vmem>>) attributes {dimension_semantics = [#tpu.dimension_semantics<parallel>], iteration_bounds = array<i64: 1>, scalar_prefetch = 0 : i64, scratch_operands = 0 : i64, tpu.core_type = #tpu.core_type<tc>, window_params = [{transform_indices = @transform_0, window_bounds = array<i64: 8, 184>}, {pipeline_mode = #tpu.pipeline_mode<synchronous>, transform_indices = @transform_1, window_bounds = array<i64: 184, 256>}, {pipeline_mode = #tpu.pipeline_mode<synchronous>, transform_indices = @transform_2, window_bounds = array<i64: 1, 256>}, {pipeline_mode = #tpu.pipeline_mode<synchronous>, transform_indices = @transform_3, window_bounds = array<i64: 256, 128>}, {pipeline_mode = #tpu.pipeline_mode<synchronous>, transform_indices = @transform_4, window_bounds = array<i64: 1, 128>}, {pipeline_mode = #tpu.pipeline_mode<synchronous>, transform_indices = @transform_5, window_bounds = array<i64: 128, 64>}, {pipeline_mode = #tpu.pipeline_mode<synchronous>, transform_indices = @transform_6, window_bounds = array<i64: 1, 64>}, {pipeline_mode = #tpu.pipeline_mode<synchronous>, transform_indices = @transform_7, window_bounds = array<i64: 64, 10>}, {pipeline_mode = #tpu.pipeline_mode<synchronous>, transform_indices = @transform_8, window_bounds = array<i64: 1, 10>}, {transform_indices = @transform_9, window_bounds = array<i64: 8, 10>}]} {
    %c0 = arith.constant 0 : index
    %c0_0 = arith.constant 0 : index
    %0 = vector.load %arg1[%c0, %c0_0] : memref<8x184xf32, #tpu.memory_space<vmem>>, vector<8x184xf32>
    %1 = arith.truncf %0 : vector<8x184xf32> to vector<8x184xbf16>
    %c0_1 = arith.constant 0 : index
    %c0_2 = arith.constant 0 : index
    %2 = vector.load %arg2[%c0_1, %c0_2] : memref<184x256xbf16, #tpu.memory_space<vmem>>, vector<184x256xbf16>
    %cst = arith.constant dense<0.000000e+00> : vector<8x256xf32>
    %3 = tpu.matmul %1, %2, %cst {dimension_numbers = #tpu.dot_dimension_numbers<[1], [0], [0], [1], [0, 0, 1, 1], [], []>} : vector<8x184xbf16>, vector<184x256xbf16>, vector<8x256xf32> -> vector<8x256xf32>
    %c0_3 = arith.constant 0 : index
    %c0_4 = arith.constant 0 : index
    %4 = vector.load %arg3[%c0_3, %c0_4] : memref<1x256xf32, #tpu.memory_space<vmem>>, vector<1x256xf32>
    %5 = vector.broadcast %4 : vector<1x256xf32> to vector<8x256xf32>
    %6 = arith.addf %3, %5 : vector<8x256xf32>
    %cst_5 = arith.constant 0.000000e+00 : f32
    %7 = vector.broadcast %cst_5 : f32 to vector<8x256xf32>
    %8 = arith.maximumf %6, %7 : vector<8x256xf32>
    %9 = arith.truncf %8 : vector<8x256xf32> to vector<8x256xbf16>
    %c0_6 = arith.constant 0 : index
    %c0_7 = arith.constant 0 : index
    %10 = vector.load %arg4[%c0_6, %c0_7] : memref<256x128xbf16, #tpu.memory_space<vmem>>, vector<256x128xbf16>
    %cst_8 = arith.constant dense<0.000000e+00> : vector<8x128xf32>
    %11 = tpu.matmul %9, %10, %cst_8 {dimension_numbers = #tpu.dot_dimension_numbers<[1], [0], [0], [1], [0, 0, 1, 1], [], []>} : vector<8x256xbf16>, vector<256x128xbf16>, vector<8x128xf32> -> vector<8x128xf32>
    %c0_9 = arith.constant 0 : index
    %c0_10 = arith.constant 0 : index
    %12 = vector.load %arg5[%c0_9, %c0_10] : memref<1x128xf32, #tpu.memory_space<vmem>>, vector<1x128xf32>
    %13 = vector.broadcast %12 : vector<1x128xf32> to vector<8x128xf32>
    %14 = arith.addf %11, %13 : vector<8x128xf32>
    %cst_11 = arith.constant 0.000000e+00 : f32
    %15 = vector.broadcast %cst_11 : f32 to vector<8x128xf32>
    %16 = arith.maximumf %14, %15 : vector<8x128xf32>
    %17 = arith.truncf %16 : vector<8x128xf32> to vector<8x128xbf16>
    %c0_12 = arith.constant 0 : index
    %c0_13 = arith.constant 0 : index
    %18 = vector.load %arg6[%c0_12, %c0_13] : memref<128x64xbf16, #tpu.memory_space<vmem>>, vector<128x64xbf16>
    %cst_14 = arith.constant dense<0.000000e+00> : vector<8x64xf32>
    %19 = tpu.matmul %17, %18, %cst_14 {dimension_numbers = #tpu.dot_dimension_numbers<[1], [0], [0], [1], [0, 0, 1, 1], [], []>} : vector<8x128xbf16>, vector<128x64xbf16>, vector<8x64xf32> -> vector<8x64xf32>
    %c0_15 = arith.constant 0 : index
    %c0_16 = arith.constant 0 : index
    %20 = vector.load %arg7[%c0_15, %c0_16] : memref<1x64xf32, #tpu.memory_space<vmem>>, vector<1x64xf32>
    %21 = vector.broadcast %20 : vector<1x64xf32> to vector<8x64xf32>
    %22 = arith.addf %19, %21 : vector<8x64xf32>
    %cst_17 = arith.constant 0.000000e+00 : f32
    %23 = vector.broadcast %cst_17 : f32 to vector<8x64xf32>
    %24 = arith.maximumf %22, %23 : vector<8x64xf32>
    %25 = arith.truncf %24 : vector<8x64xf32> to vector<8x64xbf16>
    %c0_18 = arith.constant 0 : index
    %c0_19 = arith.constant 0 : index
    %26 = vector.load %arg8[%c0_18, %c0_19] : memref<64x10xbf16, #tpu.memory_space<vmem>>, vector<64x10xbf16>
    %cst_20 = arith.constant dense<0.000000e+00> : vector<8x10xf32>
    %27 = tpu.matmul %25, %26, %cst_20 {dimension_numbers = #tpu.dot_dimension_numbers<[1], [0], [0], [1], [0, 0, 1, 1], [], []>} : vector<8x64xbf16>, vector<64x10xbf16>, vector<8x10xf32> -> vector<8x10xf32>
    %c0_21 = arith.constant 0 : index
    %c0_22 = arith.constant 0 : index
    %28 = vector.load %arg9[%c0_21, %c0_22] : memref<1x10xf32, #tpu.memory_space<vmem>>, vector<1x10xf32>
    %29 = vector.broadcast %28 : vector<1x10xf32> to vector<8x10xf32>
    %30 = arith.addf %27, %29 : vector<8x10xf32>
    %31 = arith.negf %30 : vector<8x10xf32>
    %32 = math.exp %31 : vector<8x10xf32>
    %cst_23 = arith.constant 1.000000e+00 : f32
    %33 = vector.broadcast %cst_23 : f32 to vector<8x10xf32>
    %34 = arith.addf %33, %32 : vector<8x10xf32>
    %35 = arith.divf %33, %34 : vector<8x10xf32>
    %36 = arith.truncf %35 : vector<8x10xf32> to vector<8x10xbf16>
    %c0_24 = arith.constant 0 : index
    %c0_25 = arith.constant 0 : index
    %37 = vector.load %arg10[%c0_24, %c0_25] : memref<8x10xbf16, #tpu.memory_space<vmem>>, vector<8x10xbf16>
    tpu.vector_store %arg10[%c0_24, %c0_25], %36 {strides = array<i32>} : memref<8x10xbf16, #tpu.memory_space<vmem>>, vector<8x10xbf16>,
    return
  }
  func.func @transform_0(%arg0: i32) -> (i32, i32) {
    %c0_i32 = arith.constant 0 : i32
    %c0_i32_0 = arith.constant 0 : i32
    return %arg0, %c0_i32 : i32, i32
  }
  func.func @transform_1(%arg0: i32) -> (i32, i32) {
    %c0_i32 = arith.constant 0 : i32
    %c0_i32_0 = arith.constant 0 : i32
    %c0_i32_1 = arith.constant 0 : i32
    return %c0_i32, %c0_i32_0 : i32, i32
  }
  func.func @transform_2(%arg0: i32) -> (i32, i32) {
    %c0_i32 = arith.constant 0 : i32
    %c0_i32_0 = arith.constant 0 : i32
    %c0_i32_1 = arith.constant 0 : i32
    return %c0_i32, %c0_i32_0 : i32, i32
  }
  func.func @transform_3(%arg0: i32) -> (i32, i32) {
    %c0_i32 = arith.constant 0 : i32
    %c0_i32_0 = arith.constant 0 : i32
    %c0_i32_1 = arith.constant 0 : i32
    return %c0_i32, %c0_i32_0 : i32, i32
  }
  func.func @transform_4(%arg0: i32) -> (i32, i32) {
    %c0_i32 = arith.constant 0 : i32
    %c0_i32_0 = arith.constant 0 : i32
    %c0_i32_1 = arith.constant 0 : i32
    return %c0_i32, %c0_i32_0 : i32, i32
  }
  func.func @transform_5(%arg0: i32) -> (i32, i32) {
    %c0_i32 = arith.constant 0 : i32
    %c0_i32_0 = arith.constant 0 : i32
    %c0_i32_1 = arith.constant 0 : i32
    return %c0_i32, %c0_i32_0 : i32, i32
  }
  func.func @transform_6(%arg0: i32) -> (i32, i32) {
    %c0_i32 = arith.constant 0 : i32
    %c0_i32_0 = arith.constant 0 : i32
    %c0_i32_1 = arith.constant 0 : i32
    return %c0_i32, %c0_i32_0 : i32, i32
  }
  func.func @transform_7(%arg0: i32) -> (i32, i32) {
    %c0_i32 = arith.constant 0 : i32
    %c0_i32_0 = arith.constant 0 : i32
    %c0_i32_1 = arith.constant 0 : i32
    return %c0_i32, %c0_i32_0 : i32, i32
  }
  func.func @transform_8(%arg0: i32) -> (i32, i32) {
    %c0_i32 = arith.constant 0 : i32
    %c0_i32_0 = arith.constant 0 : i32
    %c0_i32_1 = arith.constant 0 : i32
    return %c0_i32, %c0_i32_0 : i32, i32
  }
  func.func @transform_9(%arg0: i32) -> (i32, i32) {
    %c0_i32 = arith.constant 0 : i32
    %c0_i32_0 = arith.constant 0 : i32
    return %arg0, %c0_i32 : i32, i32
  }
}

</mosaic_0001>

<bundles_post_ra>
// kernel: range_network_probs.1
= control target key start
LH: loop header
LB: loop body
LE: loop exit
PB: predicated region body
PF: predicated region fallthrough
CT: control target
= control target key end

     0   :  { %14 = vsyncpa [#allocation3], 0  ;;  %s1280_s0 = inlined_call_operand.hbm [shape: f32[8,184], index: 0, kind: input, shape index: {}]   ;;  %s1281_s1 = inlined_call_operand.hbm [shape: bf16[184,256], index: 1, kind: input, shape index: {}]   ;;  %s1282_s2 = inlined_call_operand.vmem [shape: f32[1,256], index: 2, kind: input, shape index: {}]   ;;  %s1283_s3 = inlined_call_operand.vmem [shape: bf16[256,128], index: 3, kind: input, shape index: {}]   ;;  %s1284_s4 = inlined_call_operand.hbm [shape: f32[1,128], index: 4, kind: input, shape index: {}]   ;;  %s1285_s5 = inlined_call_operand.vmem [shape: bf16[128,64], index: 5, kind: input, shape index: {}]   ;;  %s1286_s6 = inlined_call_operand.hbm [shape: f32[1,64], index: 6, kind: input, shape index: {}]   ;;  %s1287_s7 = inlined_call_operand.vmem [shape: bf16[64,10], index: 7, kind: input, shape index: {}]   ;;  %s1288_s8 = inlined_call_operand.hbm [shape: f32[1,10], index: 8, kind: input, shape index: {}]   ;;  %s1289_s9 = inlined_call_operand.hbm [shape: bf16[8,10], index: 9, kind: output, shape index: {}]  }
   0x1   :  { %15 = vsyncpa [#allocation6], 0 }
   0x2   :  { %16 = vsyncpa [#allocation9], 0 }
   0x3   :  { %17 = vsyncpa [#allocation4], 0  ;;  %s1047_s30 = smov [#allocation5]   ;;  %s907_s13 = scalar_lea.hbm %s1281_s1, 2944 }
   0x4   :  { %s33_s10 = sshll.u32 %s1047_s30, 4  ;;  %p908_p0 = scmp.ne.s32.totalorder %s1281_s1, %s907_s13  ;;  %s34_s10 = int_to_ptr.vmem [resolvable:$true] %s33_s10 }
   0x5   :  { %p911_p1 = scmp.lt.u32.totalorder %s907_s13, %s1281_s1 }
   0x7   :  { %p913_p2 = pnand %p911_p1, %p908_p0 }
   0x9   :  { %916 = shalt.err (!%p913_p2)
}
   0xa   :  { %s917_s18 = scalar_lea.vmem %s34_s10, 2944  ;;  %p922_p4 = scmp.lt.s32.totalorder %s34_s10, %s34_s10 }
   0xb   :  { %p918_p3 = scmp.ne.s32.totalorder %s34_s10, %s917_s18  ;;  %p923_p5 = scmp.lt.s32.totalorder %s917_s18, %s917_s18 }
   0xd   :  { %p924_p6 = por %p923_p5, %p922_p4 }
   0xf   :  { %p925_p7 = pnand %p924_p6, %p918_p3 }
  0x11   :  { %928 = shalt.err (!%p925_p7)
}
  0x12   :  { %s1048_s19 = smov 128   ;;  %s1049_s20 = smov 8  }
  0x13   :  { %39 = dma.hbm_to_vmem [thread:$0]  %s1281_s1, 2944, %s34_s10, [#allocation6], %s1048_s19, %s1048_s19, %s1049_s20  }
  0x14   :  { %s1050_s23 = smov [#allocation8]   ;;  %s1051_s25 = smov [#allocation2]  }
  0x15   :  { %s62_s24 = sshll.u32 %s1050_s23, 4  ;;  %s24_s26 = sshll.u32 %s1051_s25, 4  ;;  %s63_s24 = int_to_ptr.vmem [resolvable:$true] %s62_s24  ;;  %s25_s26 = int_to_ptr.vmem [resolvable:$true] %s24_s26 }
  0x16   :  { %s929_s29 = scalar_lea.hbm %s1286_s6, 16 }
  0x17   :  { %p930_p8 = scmp.ne.s32.totalorder %s1286_s6, %s929_s29  ;;  %p933_p9 = scmp.lt.u32.totalorder %s929_s29, %s1286_s6 }
  0x19   :  { %p935_p10 = pnand %p933_p9, %p930_p8 }
  0x1b   :  { %938 = shalt.err (!%p935_p10)
}
  0x1c   :  { %s939_s1 = scalar_lea.vmem %s63_s24, 16  ;;  %s943_s10 = scalar_lea.vmem %s63_s24, 32 }
  0x1d   :  { %p940_p11 = scmp.ne.s32.totalorder %s63_s24, %s939_s1  ;;  %p944_p12 = scmp.lt.s32.totalorder %s63_s24, %s63_s24 }
  0x1e   :  { %p945_p13 = scmp.lt.s32.totalorder %s943_s10, %s939_s1 }
  0x20   :  { %p946_p0 = por %p945_p13, %p944_p12 }
  0x22   :  { %p947_p1 = pnand %p946_p0, %p940_p11 }
  0x24   :  { %950 = shalt.err (!%p947_p1)
}
  0x25   :  { %65 = dma.hbm_to_vmem [thread:$0]  %s1286_s6, 16, %s63_s24, [#allocation9]  }
  0x26   :  { %s951_s18 = scalar_lea.hbm %s1280_s0, 256 }
  0x27   :  { %p952_p2 = scmp.ne.s32.totalorder %s1280_s0, %s951_s18  ;;  %p955_p3 = scmp.lt.u32.totalorder %s951_s18, %s1280_s0 }
  0x29   :  { %p957_p4 = pnand %p955_p3, %p952_p2 }
  0x2b   :  { %960 = shalt.err (!%p957_p4)
}
  0x2c   :  { %s961_s23 = scalar_lea.vmem %s25_s26, 256  ;;  %p966_p6 = scmp.lt.s32.totalorder %s25_s26, %s25_s26 }
  0x2d   :  { %p962_p5 = scmp.ne.s32.totalorder %s25_s26, %s961_s23  ;;  %p967_p7 = scmp.lt.s32.totalorder %s961_s23, %s961_s23 }
  0x2f   :  { %p968_p8 = por %p967_p7, %p966_p6 }
  0x31   :  { %p969_p9 = pnand %p968_p8, %p962_p5 }
  0x33   :  { %972 = shalt.err (!%p969_p9)
}
  0x34   :  { %27 = dma.hbm_to_vmem [thread:$0]  %s1280_s0, 256, %s25_s26, [#allocation3]  }
  0x35   :  { %s1052_s25 = smov [#allocation7]   ;;  %s1053_s28 = smov [#allocation10]  }
  0x36   :  { %s50_s27 = sshll.u32 %s1052_s25, 4  ;;  %s74_s29 = sshll.u32 %s1053_s28, 4  ;;  %s51_s27 = int_to_ptr.vmem [resolvable:$true] %s50_s27  ;;  %s75_s29 = int_to_ptr.vmem [resolvable:$true] %s74_s29 }
  0x37   :  { %s973_s12 = scalar_lea.hbm %s1284_s4, 16 }
  0x38   :  { %p974_p10 = scmp.ne.s32.totalorder %s1284_s4, %s973_s12  ;;  %p977_p11 = scmp.lt.u32.totalorder %s973_s12, %s1284_s4 }
  0x3a   :  { %p979_p12 = pnand %p977_p11, %p974_p10 }
  0x3c   :  { %982 = shalt.err (!%p979_p12)
}
  0x3d   :  { %s983_s0 = scalar_lea.vmem %s51_s27, 16  ;;  %s987_s26 = scalar_lea.vmem %s51_s27, 32 }
  0x3e   :  { %p984_p13 = scmp.ne.s32.totalorder %s51_s27, %s983_s0  ;;  %p988_p0 = scmp.lt.s32.totalorder %s51_s27, %s51_s27 }
  0x3f   :  { %p989_p1 = scmp.lt.s32.totalorder %s987_s26, %s983_s0 }
  0x41   :  { %p990_p2 = por %p989_p1, %p988_p0 }
  0x43   :  { %p991_p3 = pnand %p990_p2, %p984_p13 }
  0x45   :  { %994 = shalt.err (!%p991_p3)
}
  0x46   :  { %53 = dma.hbm_to_vmem [thread:$0]  %s1284_s4, 16, %s51_s27, [#allocation6]  }
  0x47   :  { %s995_s19 = scalar_lea.hbm %s1288_s8, 16 }
  0x48   :  { %p996_p4 = scmp.ne.s32.totalorder %s1288_s8, %s995_s19  ;;  %p999_p5 = scmp.lt.u32.totalorder %s995_s19, %s1288_s8 }
  0x4a   :  { %p1001_p6 = pnand %p999_p5, %p996_p4 }
  0x4c   :  { %1004 = shalt.err (!%p1001_p6)
}
  0x4d   :  { %s1005_s6 = scalar_lea.vmem %s75_s29, 16  ;;  %s1009_s24 = scalar_lea.vmem %s75_s29, 32 }
  0x4e   :  { %p1006_p7 = scmp.ne.s32.totalorder %s75_s29, %s1005_s6  ;;  %p1010_p8 = scmp.lt.s32.totalorder %s75_s29, %s75_s29 }
  0x4f   :  { %p1011_p9 = scmp.lt.s32.totalorder %s1009_s24, %s1005_s6 }
  0x51   :  { %p1012_p10 = por %p1011_p9, %p1010_p8 }
  0x53   :  { %p1013_p11 = pnand %p1012_p10, %p1006_p7 }
  0x55   :  { %1016 = shalt.err (!%p1013_p11)
}
  0x56   :  { %77 = dma.hbm_to_vmem [thread:$0]  %s1288_s8, 16, %s75_s29, [#allocation9]  }
  0x57   :  { %1039 = dma.done.wait [#allocation3], 256  }
  0x58   :  { %1040 = vsyncadd [#allocation3], 4294967040 }
  0x59   :  { %1041 = dma.done.wait [#allocation6], 2960  }
  0x5a   :  { %1042 = vsyncadd [#allocation6], 4294964336 }
  0x5b   :  { %1043 = dma.done.wait [#allocation9], 32  }
  0x5c   :  { %1044 = vsyncadd [#allocation9], 4294967264  ;;  %v840_v0 = vld [vmem:[#allocation5 + $0x4] ss:$8 sps:$4 sm:$0xff]   ;;  %v842_v1 = vld [vmem:[#allocation5] ss:$8 sps:$4 sm:$0xff]   ;;  %v123_v47 = vlaneseq }
  0x5d   :  { %259 = vmatprep.subr.bf16.mxu0 %v840_v0  ;;  %v843_v2 = vld [vmem:[#allocation5 + $0x14] ss:$8 sps:$4 sm:$0xff]   ;;  %v845_v3 = vld [vmem:[#allocation5 + $0x10] ss:$8 sps:$4 sm:$0xff]   ;;  %v846_v4 = vld [vmem:[#allocation5 + $0x24] ss:$8 sps:$4 sm:$0xff]  }
  0x5e   :  { %260 = vmatpush1.bf16.msra.mxu0 %v842_v1  ;;  %v848_v5 = vld [vmem:[#allocation5 + $0x20] ss:$8 sps:$4 sm:$0xff]   ;;  %v849_v6 = vld [vmem:[#allocation5 + $0x34] ss:$8 sps:$4 sm:$0xff]   ;;  %v851_v7 = vld [vmem:[#allocation5 + $0x30] ss:$8 sps:$4 sm:$0xff]  }
  0x5f   :  { %261 = vmatprep.subr.bf16.mxu0 %v843_v2  ;;  %v852_v8 = vld [vmem:[#allocation5 + $0x44] ss:$8 sps:$4 sm:$0xff]   ;;  %v854_v9 = vld [vmem:[#allocation5 + $0x40] ss:$8 sps:$4 sm:$0xff]   ;;  %v855_v10 = vld [vmem:[#allocation5 + $0x54] ss:$8 sps:$4 sm:$0xff]  }
  0x60   :  { %v95_v11 = vld [vmem:[#allocation2 + $0x8] sm:$0xff]  ;;  %vm248_vm0 = vcmask 457728   ;;  %v875_v13 = vld [vmem:[%s1283_s3 + $0x40] sm:$0xff]   ;;  %v858_v16 = vld [vmem:[#allocation5 + $0x64] ss:$8 sps:$4 sm:$0xff]   ;;  %vm252_vm1 = vcmask 1043456  }
  0x61   :  { %v97_v12 = vpack.c.bf16 %v95_v11, %v95_v11  ;;  %v857_v14 = vld [vmem:[#allocation5 + $0x50] ss:$8 sps:$4 sm:$0xff]   ;;  %762 = vmatprep.subr.bf16.mxu1 %v875_v13  ;;  %v879_v19 = vld [vmem:[%s1283_s3 + $0x50] sm:$0xff]   ;;  %v861_v21 = vld [vmem:[#allocation5 + $0x74] ss:$8 sps:$4 sm:$0xff]   ;;  %v1054_v46 = vmov 0.0  }
  0x62   :  { %262 = vmatpush1.bf16.msra.mxu0 %v845_v3  ;;  %v876_v15 = vld [vmem:[%s1283_s3] sm:$0xff]   ;;  %v877_v17 = vld [vmem:[%s1283_s3 + $0x48] sm:$0xff]   ;;  %v860_v20 = vld [vmem:[#allocation5 + $0x60] ss:$8 sps:$4 sm:$0xff]   ;;  %v124_v48 = vshrl.u32 %v123_v47, 7  ;;  %vm1055_vm2 = vmmov 0  }
  0x63   :  { %263 = vmatprep.subr.bf16.mxu0 %v846_v4  ;;  %728 = vmatprep.mubr.msk.bf16.mxu0 %vm248_vm0, %v97_v12  ;;  %v878_v18 = vld [vmem:[%s1283_s3 + $0x8] sm:$0xff]   ;;  %v880_v22 = vld [vmem:[%s1283_s3 + $0x10] sm:$0xff]   ;;  %v881_v23 = vld [vmem:[%s1283_s3 + $0x58] sm:$0xff]   ;;  %vm633_vm3 = vcmask 523264   ;;  %vm684_vm4 = vcmask 76800  }
  0x64   :  { %763 = vmatpush3.bf16.msra.mxu1 %v876_v15  ;;  %v863_v24 = vld [vmem:[#allocation5 + $0x70] ss:$8 sps:$4 sm:$0xff]   ;;  %v864_v25 = vld [vmem:[#allocation5 + $0x84] ss:$8 sps:$4 sm:$0xff]   ;;  %v866_v28 = vld [vmem:[#allocation5 + $0x80] ss:$8 sps:$4 sm:$0xff]  }
  0x65   :  { %764 = vmatprep.subr.bf16.mxu1 %v877_v17  ;;  %v882_v26 = vld [vmem:[%s1283_s3 + $0x18] sm:$0xff]   ;;  %v883_v27 = vld [vmem:[%s1283_s3 + $0x60] sm:$0xff]   ;;  %v885_v31 = vld [vmem:[%s1283_s3 + $0x68] sm:$0xff]   ;;  %v125_v49 = vsub.s32 0, %v124_v48  ;;  %v129_v51 = vsub.s32 1, %v124_v48 }
  0x66   :  { %264 = vmatpush1.bf16.msra.mxu0 %v848_v5  ;;  %v884_v29 = vld [vmem:[%s1283_s3 + $0x20] sm:$0xff]   ;;  %v886_v33 = vld [vmem:[%s1283_s3 + $0x28] sm:$0xff]   ;;  %v870_v34 = vld [vmem:[#allocation5 + $0xa4] ss:$8 sps:$4 sm:$0xff]  }
  0x67   :  { %265 = vmatprep.subr.bf16.mxu0 %v849_v6  ;;  %v867_v30 = vld [vmem:[#allocation5 + $0x94] ss:$8 sps:$4 sm:$0xff]   ;;  %v869_v32 = vld [vmem:[#allocation5 + $0x90] ss:$8 sps:$4 sm:$0xff]   ;;  %v872_v36 = vld [vmem:[#allocation5 + $0xa0] ss:$8 sps:$4 sm:$0xff]  }
  0x68   :  { %765 = vmatpush3.bf16.msra.mxu1 %v878_v18  ;;  %v120_v35 = vld [vmem:[#allocation5 + $0xb0] sm:$0xff]  ;;  %v887_v42 = vld [vmem:[%s1283_s3 + $0x70] sm:$0xff]   ;;  %v889_v44 = vld [vmem:[%s1283_s3 + $0x78] sm:$0xff]  }
  0x69   :  { %766 = vmatprep.subr.bf16.mxu1 %v879_v19  ;;  %v726_v37 = vcombine.high %v120_v35, %v120_v35  ;;  %v725_v38 = vcombine.low %v120_v35, %v120_v35  ;;  %v94_v39 = vld [vmem:[#allocation2] sm:$0xff]  ;;  %v888_v43 = vld [vmem:[%s1283_s3 + $0x30] sm:$0xff]   ;;  %v890_v45 = vld [vmem:[%s1283_s3 + $0x38] sm:$0xff]  }
  0x6a   :  { %266 = vmatpush1.bf16.msra.mxu0 %v851_v7  ;;  %v96_v41 = vpack.c.bf16 %v94_v39, %v94_v39  ;;  %v121_v50 = vld [vmem:[%s1282_s2] sm:$0x3]  ;;  %v892_v1 = vld [vmem:[%s1285_s5 + $0x8] sm:$0xff]   ;;  %v893_v2 = vld [vmem:[%s1285_s5 + $0x10] sm:$0xff]  }
  0x6b   :  { %267 = vmatprep.subr.bf16.mxu0 %v852_v8  ;;  %v254_v40 = vsel %vm252_vm1, %v725_v38, 0  ;;  %v126_v52 = vrot.slane %v121_v50, %v125_v49  ;;  %v130_v53 = vrot.slane %v121_v50, %v129_v51  ;;  %v891_v63 = vld [vmem:[%s1285_s5] sm:$0xff]   ;;  %v894_v3 = vld [vmem:[%s1285_s5 + $0x18] sm:$0xff]   ;;  %v896_v5 = vld [vmem:[%s1285_s5 + $0x28] sm:$0xff]  }
  0x6c   :  { %767 = vmatpush3.bf16.msra.mxu1 %v880_v22  ;;  %v895_v4 = vld [vmem:[%s1285_s5 + $0x20] sm:$0xff]   ;;  %v897_v6 = vld [vmem:[%s1285_s5 + $0x30] sm:$0xff]   ;;  %v898_v7 = vld [vmem:[%s1285_s5 + $0x38] sm:$0xff]  }
  0x6d   :  { %768 = vmatprep.subr.bf16.mxu1 %v881_v23  ;;  %v899_v8 = vld [vmem:[%s1287_s7] sm:$0xff]   ;;  %v729_v11 = vld [vmem:[#allocation7] ss:$0 sm:$0xff]  ;;  %v901_v19 = vld [vmem:[%s1287_s7 + $0x10] sm:$0xff]  }
  0x6e   :  { %268 = vmatpush1.bf16.msra.mxu0 %v854_v9  ;;  %v900_v9 = vld [vmem:[%s1287_s7 + $0x8] sm:$0xff]  }
  0x6f   :  { %269 = vmatprep.subr.bf16.mxu0 %v855_v10 }
  0x70   :  { %769 = vmatpush3.bf16.msra.mxu1 %v882_v26 }
  0x71   :  { %770 = vmatprep.subr.bf16.mxu1 %v883_v27 }
  0x72   :  { %270 = vmatpush1.bf16.msra.mxu0 %v857_v14 }
  0x73   :  { %271 = vmatprep.subr.bf16.mxu0 %v858_v16 }
  0x74   :  { %771 = vmatpush3.bf16.msra.mxu1 %v884_v29  ;;  %v755_v29 = vld [vmem:[#allocation10] ss:$0 sm:$0xff] }
  0x75   :  { %772 = vmatprep.subr.bf16.mxu1 %v885_v31 }
  0x76   :  { %272 = vmatpush1.bf16.msra.mxu0 %v860_v20  ;;  %v902_v20 = vld [vmem:[%s1287_s7 + $0x18] sm:$0xff]   ;;  %s1056_s7 = smov [#allocation11]  }
  0x77   :  { %273 = vmatprep.subr.bf16.mxu0 %v861_v21  ;;  %v746_v21 = vld [vmem:[#allocation8] ss:$0 sm:$0xff]  ;;  %s692_s29 = sshll.u32 %s1056_s7, 4  ;;  %s693_s29 = int_to_ptr.vmem [resolvable:$true] %s692_s29 }
  0x78   :  { %773 = vmatpush3.bf16.msra.mxu1 %v886_v33  ;;  %s1017_s30 = scalar_lea.vmem %s693_s29, 64  ;;  %p1022_p13 = scmp.lt.s32.totalorder %s693_s29, %s693_s29 }
  0x79   :  { %774 = vmatprep.subr.bf16.mxu1 %v887_v42  ;;  %p1018_p12 = scmp.ne.s32.totalorder %s693_s29, %s1017_s30  ;;  %p1023_p0 = scmp.lt.s32.totalorder %s1017_s30, %s1017_s30 }
  0x7a   :  { %274 = vmatpush1.bf16.msra.mxu0 %v863_v24 }
  0x7b   :  { %275 = vmatprep.subr.bf16.mxu0 %v864_v25  ;;  %p1024_p1 = por %p1023_p0, %p1022_p13 }
  0x7c   :  { %775 = vmatpush3.bf16.msra.mxu1 %v888_v43 }
  0x7d   :  { %776 = vmatprep.subr.bf16.mxu1 %v889_v44  ;;  %p1025_p2 = pnand %p1024_p1, %p1018_p12 }
  0x7e   :  { %276 = vmatpush1.bf16.msra.mxu0 %v866_v28 }
  0x7f   :  { %277 = vmatprep.subr.bf16.mxu0 %v867_v30 }
  0x80   :  { %777 = vmatpush3.bf16.msra.mxu1 %v890_v45 }
  0x81   :  { %798 = vmatprep.subr.bf16.mxu1 %v1054_v46 }
  0x82   :  { %278 = vmatpush1.bf16.msra.mxu0 %v869_v32 }
  0x83   :  { %279 = vmatprep.subr.bf16.mxu0 %v870_v34 }
  0x86   :  { %280 = vmatpush1.bf16.msra.mxu0 %v872_v36 }
  0x87   :  { %727 = vmatprep.subr.msk.bf16.mxu0 %vm252_vm1, %v726_v37 }
  0x8a   :  { %282 = vmatpush1.bf16.msra.mxu0 %v254_v40 }
  0x8b   :  { %818 = vmatprep.subr.bf16.mxu0 %v1054_v46 }
  0x8d   :  { %292 = vmatmul.mubr.bf16.vlgmr.msra.gmra.mrb[0].mxu0 %v96_v41 }
  0x8e   :  { %826 = vmatprep.mubr.msk.bf16.mxu0 %vm1055_vm2, %v1054_v46  ;;  %819 = vmatpush3.bf16.msra.mxu0 %v899_v8 }
  0x8f   :  { %820 = vmatprep.subr.bf16.mxu0 %v1054_v46 }
  0x92   :  { %821 = vmatpush3.bf16.msra.mxu0 %v900_v9 }
  0x93   :  { %822 = vmatprep.subr.bf16.mxu0 %v1054_v46 }
  0x96   :  { %823 = vmatpush3.bf16.msra.mxu0 %v901_v19 }
  0x97   :  { %824 = vmatprep.subr.bf16.mxu0 %v1054_v46 }
  0x9a   :  { %825 = vmatpush3.bf16.msra.mxu0 %v902_v20 }
 0x160   :  { %v293_v54 = vpop.f32.mrb[0].mxu0 }
 0x161   :  { %v294_v55 = vadd.f32 %v293_v54, %v126_v52  ;;  %v295_v56 = vpop.f32.mrb[1].mxu0 }
 0x162   :  { %v296_v57 = vadd.f32 %v295_v56, %v130_v53  ;;  %v297_v58 = vpop.f32.mrb[2].mxu0 }
 0x163   :  { %v300_v59 = vmax.f32 %v294_v55, 0.0  ;;  %v298_v60 = vpop.f32.mrb[3].mxu0 }
 0x164   :  { %v301_v61 = vmax.f32 %v296_v57, 0.0 }
 0x165   :  { %v302_v0 = vpack.c.bf16 %v300_v59, %v300_v59 }
 0x166   :  { %v303_v62 = vpack.c.bf16 %v301_v61, %v301_v61 }
 0x168   :  { %471 = vmatprep.mubr.bf16.mxu1 %v303_v62 }
 0x169   :  { %472 = vmatmul.mubr.bf16.vlgmr.msra.gmra.mrb[0].mxu1 %v302_v0 }
 0x16a   :  { %799 = vmatpush3.bf16.msra.mxu1 %v891_v63  ;;  %814 = vmatprep.mubr.msk.bf16.mxu1 %vm1055_vm2, %v1054_v46 }
 0x16b   :  { %800 = vmatprep.subr.bf16.mxu1 %v1054_v46 }
 0x16e   :  { %801 = vmatpush3.bf16.msra.mxu1 %v892_v1 }
 0x16f   :  { %802 = vmatprep.subr.bf16.mxu1 %v1054_v46 }
 0x172   :  { %803 = vmatpush3.bf16.msra.mxu1 %v893_v2 }
 0x173   :  { %804 = vmatprep.subr.bf16.mxu1 %v1054_v46 }
 0x176   :  { %805 = vmatpush3.bf16.msra.mxu1 %v894_v3 }
 0x177   :  { %806 = vmatprep.subr.bf16.mxu1 %v1054_v46 }
 0x17a   :  { %807 = vmatpush3.bf16.msra.mxu1 %v895_v4 }
 0x17b   :  { %808 = vmatprep.subr.bf16.mxu1 %v1054_v46 }
 0x17e   :  { %809 = vmatpush3.bf16.msra.mxu1 %v896_v5 }
 0x17f   :  { %810 = vmatprep.subr.bf16.mxu1 %v1054_v46 }
 0x182   :  { %811 = vmatpush3.bf16.msra.mxu1 %v897_v6 }
 0x183   :  { %812 = vmatprep.subr.bf16.mxu1 %v1054_v46 }
 0x186   :  { %813 = vmatpush3.bf16.msra.mxu1 %v898_v7 }
 0x23c   :  { %v778_v10 = vpop.f32.mrb[0].mxu1 }
 0x23d   :  { %v779_v12 = vpop.f32.mrb[1].mxu1 }
 0x23e   :  { %v780_v13 = vadd.f32 %v779_v12, %v778_v10  ;;  %v781_v14 = vpop.f32.mrb[2].mxu1 }
 0x23f   :  { %v782_v15 = vpop.f32.mrb[3].mxu1 }
 0x240   :  { %v474_v16 = vadd.f32 %v780_v13, %v729_v11 }
 0x242   :  { %v479_v17 = vmax.f32 %v474_v16, 0.0 }
 0x244   :  { %v480_v18 = vpack.c.bf16 %v479_v17, %v479_v17 }
 0x246   :  { %815 = vmatmul.mubr.bf16.vlgmr.msra.gmra.mrb[4].mxu1 %v480_v18 }
 0x319   :  { %v586_v22 = vpop.f32.mrb[4].mxu1 }
 0x31a   :  { %v587_v23 = vadd.f32 %v746_v21, %v586_v22  ;;  %v816_v24 = vpop.f32.mrb[5].mxu1 }
 0x31b   :  { %v589_v25 = vpop.f32.mrb[6].mxu1 }
 0x31c   :  { %v592_v26 = vmax.f32 %v587_v23, 0.0  ;;  %v817_v27 = vpop.f32.mrb[7].mxu1 }
 0x31e   :  { %v593_v28 = vpack.c.bf16 %v592_v26, %v592_v26 }
 0x320   :  { %827 = vmatmul.mubr.msk.bf16.vlgmr.msra.gmra.mrb[4].mxu0 %vm633_vm3, %v593_v28 }
 0x3f3   :  { %v671_v30 = vpop.f32.mrb[4].mxu0 }
 0x3f4   :  { %v672_v31 = vadd.f32 %v755_v29, %v671_v30  ;;  %v828_v32 = vpop.f32.mrb[5].mxu0 }
 0x3f5   :  { %v674_v33 = vpop.f32.mrb[6].mxu0 }
 0x3f6   :  { %v761_v34 = vmul.f32 -1.442695, %v672_v31  ;;  %v829_v35 = vpop.f32.mrb[7].mxu0 }
 0x3f8   :  { %903 = vpow2.f32 %v761_v34 }
 0x402   :  { %v904_v36 = vpop.eup %903 }
 0x403   :  { %v680_v37 = vadd.f32 1.0, %v904_v36 }
 0x405   :  { %905 = vrcp.f32 %v680_v37 }
 0x40f   :  { %v906_v38 = vpop.eup %905 }
 0x410   :  { %v683_v39 = vpack.c.bf16 %v906_v38, %v906_v38 }
 0x412   :  { %685 = vst.msk [vmem:[#allocation11] sm:$0xf] %vm684_vm4, %v683_v39 }
 0x413   :  { %1028 = shalt.err (!%p1025_p2)
}
 0x414   :  { %s1029_s13 = scalar_lea.hbm %s1289_s9, 64 }
 0x415   :  { %p1030_p3 = scmp.ne.s32.totalorder %s1289_s9, %s1029_s13  ;;  %p1033_p4 = scmp.lt.u32.totalorder %s1029_s13, %s1289_s9 }
 0x417   :  { %p1035_p5 = pnand %p1033_p4, %p1030_p3 }
 0x419   :  { %1038 = shalt.err (!%p1035_p5)
}
 0x41a   :  { %695 = dma.vmem_to_hbm [thread:$0]  %s693_s29, 64, %s1289_s9, [#allocation4]  }
 0x41b   :  { %1045 = dma.done.wait [#allocation4], 64  }
 0x41c   :  { %1046 = vsyncadd [#allocation4], 4294967232 }
 0x41d   :  { %699 = vsyncpa [#allocation3], 1 }
 0x41e   :  { %700 = vsyncpa [#allocation6], 1 }
 0x41f   :  { %701 = vsyncpa [#allocation9], 1 }
 0x420   :  { %702 = vsyncpa [#allocation4], 1 }

</bundles_post_ra>
